<compile_context>
chip_gen: v7x
topology: tpu7x:2x2x1
jax: 0.10.0
libtpu: 0.0.40
codegen_flags: <defaults>
</compile_context>

<pallas_src>
import functools

import jax
import jax.numpy as jnp
from jax import lax
from jax.experimental import pallas as pl
from jax.experimental.pallas import tpu as pltpu


def _round_up(x, m):
    return ((x + m - 1) // m) * m


def _cdiv(a, b):
    return -(-a // b)


# ---------------------------------------------------------------------------
# In-kernel online SupCon reduction (one contrast tile per call).
# ---------------------------------------------------------------------------
def _online_supcon_step(adc, lm, pos, row, *, a_valid, scale,
                        sum_ref, cnt_ref, m_sc, s_sc, pc_sc, pa_sc):
    """adc: (block_a, block_n) f32 logits (already / temperature).
    lm:  (block_a, block_n) bool  -- valid (non-self, non-padded) contrast cols.
    pos: (block_a, block_n) bool  -- positive pairs (already ANDed with lm).
    row: (block_a, 1) int32 global anchor-row index."""
    j = pl.program_id(1)

    @pl.when(j == 0)
    def _init():
        m_sc[...] = jnp.full(m_sc.shape, -1e30, jnp.float32)
        s_sc[...] = jnp.zeros(s_sc.shape, jnp.float32)
        pc_sc[...] = jnp.zeros(pc_sc.shape, jnp.float32)
        pa_sc[...] = jnp.zeros(pa_sc.shape, jnp.float32)

    # Big-negative sentinel (NOT -inf): keeps every intermediate finite even
    # for fully-masked rows / tiles.
    neg = jnp.float32(-1e30)
    adc_m = jnp.where(lm, adc, neg)
    tile_max = jnp.max(adc_m, axis=1, keepdims=True)
    m_new = jnp.maximum(m_sc[...], tile_max)

    alpha = jnp.exp(m_sc[...] - m_new)          # 0 when no previous data
    p = jnp.where(lm, jnp.exp(adc_m - m_new), 0.0)
    s_sc[...] = alpha * s_sc[...] + jnp.sum(p, axis=1, keepdims=True)
    m_sc[...] = m_new

    pc_sc[...] = pc_sc[...] + jnp.sum(pos.astype(jnp.float32), axis=1,
                                      keepdims=True)
    # sum(pos * adc) is max-shift independent -> accumulate raw logits.
    pa_sc[...] = pa_sc[...] + jnp.sum(jnp.where(pos, adc, 0.0), axis=1,
                                      keepdims=True)

    @pl.when(j == pl.num_programs(1) - 1)
    def _finalize():
        cnt = pc_sc[...]
        # mean_log_prob_pos = sum(pos*adc)/cnt - m - log(sum exp(adc - m))
        mean_lp = (pa_sc[...] / jnp.maximum(cnt, 1.0)
                   - m_sc[...]
                   - jnp.log(jnp.maximum(s_sc[...], jnp.float32(1e-30))))
        row_valid = row < a_valid                       # drop padded anchors
        valid = jnp.logical_and(row_valid, cnt > 0.0).astype(jnp.float32)
        sum_ref[...] = jnp.full(sum_ref.shape, jnp.sum(scale * mean_lp * valid),
                                dtype=jnp.float32)
        cnt_ref[...] = jnp.full(cnt_ref.shape, jnp.sum(valid),
                                dtype=jnp.float32)


def _supcon_kernel_labels(a_ref, ct_ref, alab_ref, clab_ref,
                          sum_ref, cnt_ref,
                          m_sc, s_sc, pc_sc, pa_sc, *,
                          scale, n_valid, a_valid, block_a, block_n):
    # (block_a, Dp) @ (Dp, block_n): K on RHS sublanes, N on lanes (no vxpose).
    adc = lax.dot_general(a_ref[...], ct_ref[...],
                          dimension_numbers=(((1,), (0,)), ((), ())),
                          preferred_element_type=jnp.float32)
    # Thin iotas; comparisons broadcast to (block_a, block_n).
    row = (pl.program_id(0) * block_a
           + lax.broadcasted_iota(jnp.int32, (block_a, 1), 0))
    col = (pl.program_id(1) * block_n
           + lax.broadcasted_iota(jnp.int32, (1, block_n), 1))
    lm = jnp.logical_and(col < n_valid, row != col)
    pos = jnp.logical_and(alab_ref[...] == clab_ref[...], lm)
    _online_supcon_step(adc, lm, pos, row, a_valid=a_valid, scale=scale,
                        sum_ref=sum_ref, cnt_ref=cnt_ref,
                        m_sc=m_sc, s_sc=s_sc, pc_sc=pc_sc, pa_sc=pa_sc)


def _supcon_kernel_mask(a_ref, ct_ref, mask_ref,
                        sum_ref, cnt_ref,
                        m_sc, s_sc, pc_sc, pa_sc, *,
                        scale, n_valid, a_valid, block_a, block_n):
    adc = lax.dot_general(a_ref[...], ct_ref[...],
                          dimension_numbers=(((1,), (0,)), ((), ())),
                          preferred_element_type=jnp.float32)
    row = (pl.program_id(0) * block_a
           + lax.broadcasted_iota(jnp.int32, (block_a, 1), 0))
    col = (pl.program_id(1) * block_n
           + lax.broadcasted_iota(jnp.int32, (1, block_n), 1))
    lm = jnp.logical_and(col < n_valid, row != col)
    pos = jnp.logical_and(mask_ref[...] != 0, lm)       # int8 -> bool, one pass
    _online_supcon_step(adc, lm, pos, row, a_valid=a_valid, scale=scale,
                        sum_ref=sum_ref, cnt_ref=cnt_ref,
                        m_sc=m_sc, s_sc=s_sc, pc_sc=pc_sc, pa_sc=pa_sc)


# ---------------------------------------------------------------------------
# Tiling / VMEM planning.
# ---------------------------------------------------------------------------
def _plan_tiling(A, N, d, compute_dtype, has_mask, block_a, block_n):
    feat_b = jnp.dtype(compute_dtype).itemsize
    gran = max(8, 32 // feat_b)                 # sublane granularity of anchor
    if has_mask:
        gran = max(gran, 32)                    # int8 mask tile -> 32 rows
    d_pad = _round_up(d, 128)

    budget = 36 << 20                           # buffers + est. temporaries

    if block_a is None:
        if A <= gran:
            block_a = gran
        else:
            # >=2 anchor tiles whenever possible (feeds both v7x TensorCores).
            block_a = min(512, _round_up(_cdiv(A, 2), gran))
        while block_a > gran and 2 * block_a * d_pad * feat_b > budget // 2:
            block_a = max(gran, _round_up(block_a // 2, gran))
    else:
        block_a = _round_up(block_a, gran)
    a_pad = _round_up(A, block_a)
    num_a = a_pad // block_a

    n128 = _round_up(N, 128)
    fixed = 2 * block_a * d_pad * feat_b        # double-buffered anchor tile
    fixed += 4 * block_a * 128 * 4              # lane-padded f32 scratch accums
    per_col = 2 * d_pad * feat_b                # double-buffered contrast tile
    per_col += 8 * block_a * 4                  # ~8 f32 full-tile temporaries
    if has_mask:
        per_col += 2 * block_a                  # double-buffered int8 mask tile

    if block_n is None:
        cap = max(128, ((max(budget - fixed, 0) // per_col) // 128) * 128)
        if cap >= n128:
            block_n = n128
        else:
            block_n = _round_up(_cdiv(n128, _cdiv(n128, cap)), 128)
    else:
        block_n = _round_up(block_n, 128)
    n_pad = block_n * _cdiv(N, block_n)
    num_n = n_pad // block_n

    est = fixed + per_col * block_n + (1 << 20)
    vmem_limit = int(min(max(est * 3 // 2, 32 << 20), 64 << 20))
    return block_a, a_pad, num_a, block_n, n_pad, num_n, d_pad, vmem_limit


# ---------------------------------------------------------------------------
# Public wrapper (mirrors SupConLoss.forward).
# ---------------------------------------------------------------------------
def supcon_loss(features, labels=None, mask=None, *,
                temperature=0.07, contrast_mode='all', base_temperature=0.07,
                compute_dtype=jnp.bfloat16, block_a=None, block_n=None):
    """JAX/Pallas port of SupConLoss.forward.  Returns a scalar float32 loss.

    Deviation from PyTorch: anchors with zero positive pairs (NaN in the
    original) are excluded and the mean is taken over valid anchors only.
    Default compute_dtype=bfloat16 rounds features before the matmul
    (~1e-2 relative logit error); pass jnp.float32 for strict parity.
    """
    if features.ndim < 3:
        raise ValueError('`features` needs to be [bsz, n_views, ...]')
    if labels is not None and mask is not None:
        raise ValueError('Cannot define both `labels` and `mask`')

    bsz = features.shape[0]
    n_views = features.shape[1]
    feats = features.reshape(bsz, n_views, -1)
    d = feats.shape[-1]

    contrast_count = n_views
    # torch.cat(torch.unbind(features, dim=1), dim=0) -> view-major stacking
    contrast_feature = jnp.transpose(feats, (1, 0, 2)).reshape(
        contrast_count * bsz, d)

    if contrast_mode == 'one':
        anchor_feature = feats[:, 0]
        anchor_count = 1
    elif contrast_mode == 'all':
        anchor_feature = contrast_feature
        anchor_count = contrast_count
    else:
        raise ValueError('Unknown mode: {}'.format(contrast_mode))

    A = anchor_count * bsz
    N = contrast_count * bsz

    has_mask = mask is not None
    (block_a, a_pad, num_a, block_n, n_pad, num_n, d_pad,
     vmem_limit) = _plan_tiling(A, N, d, compute_dtype, has_mask,
                                block_a, block_n)

    inv_temp = float(1.0 / temperature)
    scale = float(-(temperature / base_temperature))

    # 1/T folded into the existing pad+cast; contrast pre-transposed once.
    anchor = jnp.zeros((a_pad, d_pad), compute_dtype).at[:A, :d].set(
        (anchor_feature.astype(jnp.float32) * inv_temp).astype(compute_dtype))
    contrast_t = jnp.zeros((d_pad, n_pad), compute_dtype).at[:d, :N].set(
        contrast_feature.astype(compute_dtype).T)

    a_spec = pl.BlockSpec((block_a, d_pad), lambda i, j: (i, 0))
    ct_spec = pl.BlockSpec((d_pad, block_n), lambda i, j: (0, j))
    out_shape = (jax.ShapeDtypeStruct((num_a, 8, 128), jnp.float32),
                 jax.ShapeDtypeStruct((num_a, 8, 128), jnp.float32))
    out_specs = (pl.BlockSpec((1, 8, 128), lambda i, j: (i, 0, 0)),
                 pl.BlockSpec((1, 8, 128), lambda i, j: (i, 0, 0)))
    scratch = [pltpu.VMEM((block_a, 1), jnp.float32)] * 4
    cparams = pltpu.CompilerParams(
        dimension_semantics=("parallel", "arbitrary"),
        vmem_limit_bytes=vmem_limit)
    common = dict(scale=scale, n_valid=N, a_valid=A,
                  block_a=block_a, block_n=block_n)

    if mask is None:
        if labels is None:
            # SimCLR: eye(bsz) mask == "every sample is its own class"
            base_labels = jnp.arange(bsz, dtype=jnp.int32)
        else:
            labels = jnp.asarray(labels).reshape(-1)
            if labels.shape[0] != bsz:
                raise ValueError('Num of labels does not match num of features')
            base_labels = labels.astype(jnp.int32)
        contrast_labels = jnp.tile(base_labels, contrast_count)            # [N]
        anchor_labels = base_labels if anchor_count == 1 else contrast_labels
        alab = jnp.full((a_pad, 1), -1, jnp.int32).at[:A, 0].set(anchor_labels)
        clab = jnp.full((1, n_pad), -1, jnp.int32).at[0, :N].set(contrast_labels)

        kernel = functools.partial(_supcon_kernel_labels, **common)
        sums, cnts = pl.pallas_call(
            kernel,
            out_shape=out_shape,
            grid=(num_a, num_n),
            in_specs=[a_spec, ct_spec,
                      pl.BlockSpec((block_a, 1), lambda i, j: (i, 0)),
                      pl.BlockSpec((1, block_n), lambda i, j: (0, j))],
            out_specs=out_specs,
            scratch_shapes=scratch,
            compiler_params=cparams,
        )(anchor, contrast_t, alab, clab)
    else:
        # Arbitrary (binary, possibly asymmetric) user mask: streamed as int8.
        base_mask = jnp.asarray(mask)
        mask_tiled = jnp.tile(base_mask != 0, (anchor_count, contrast_count))
        mask_p = jnp.zeros((a_pad, n_pad), jnp.int8).at[:A, :N].set(
            mask_tiled.astype(jnp.int8))

        kernel = functools.partial(_supcon_kernel_mask, **common)
        sums, cnts = pl.pallas_call(
            kernel,
            out_shape=out_shape,
            grid=(num_a, num_n),
            in_specs=[a_spec, ct_spec,
                      pl.BlockSpec((block_a, block_n), lambda i, j: (i, j))],
            out_specs=out_specs,
            scratch_shapes=scratch,
            compiler_params=cparams,
        )(anchor, contrast_t, mask_p)

    total = jnp.sum(sums[:, 0, 0])
    count = jnp.sum(cnts[:, 0, 0])
    return total / jnp.maximum(count, 1.0)


# ---------------------------------------------------------------------------
# Pure-JAX f32 reference mirroring the PyTorch forward (for verification).
# ---------------------------------------------------------------------------
def _supcon_loss_ref(features, labels=None, mask=None, *,
                     temperature=0.07, contrast_mode='all',
                     base_temperature=0.07):
    bsz, n_views = features.shape[0], features.shape[1]
    feats = features.reshape(bsz, n_views, -1)
    d = feats.shape[-1]
    if labels is None and mask is None:
        base_mask = jnp.eye(bsz, dtype=jnp.float32)
    elif labels is not None:
        lab = labels.reshape(-1, 1)
        base_mask = (lab == lab.T).astype(jnp.float32)
    else:
        base_mask = mask.astype(jnp.float32)
    contrast_feature = jnp.transpose(feats, (1, 0, 2)).reshape(n_views * bsz, d)
    if contrast_mode == 'one':
        anchor_feature, anchor_count = feats[:, 0], 1
    else:
        anchor_feature, anchor_count = contrast_feature, n_views
    adc = (anchor_feature @ contrast_feature.T) / temperature
    logits = adc - jnp.max(adc, axis=1, keepdims=True)
    m = jnp.tile(base_mask, (anchor_count, n_views))
    A, N = m.shape
    logits_mask = 1.0 - jnp.eye(A, N, dtype=jnp.float32)
    m = m * logits_mask
    exp_logits = jnp.exp(logits) * logits_mask
    log_prob = logits - jnp.log(exp_logits.sum(1, keepdims=True))
    mean_log_prob_pos = (m * log_prob).sum(1) / m.sum(1)
    loss = -(temperature / base_temperature) * mean_log_prob_pos
    return loss.mean()


if __name__ == "__main__":
    key = jax.random.PRNGKey(0)
    bsz, n_views, dim = 8, 2, 32

    features = jax.random.normal(key, (bsz, n_views, dim), dtype=jnp.float32)
    features = features / jnp.linalg.norm(features, axis=-1, keepdims=True)
    labels = jnp.array([0, 1, 2, 3, 0, 1, 2, 3], dtype=jnp.int32)
    explicit_mask = (labels[:, None] == labels[None, :]).astype(jnp.float32)

    # ---- f32 compute path: strict check against the pure-JAX reference ----
    loss_sup = supcon_loss(features, labels=labels, compute_dtype=jnp.float32)
    loss_unsup = supcon_loss(features, compute_dtype=jnp.float32)
    loss_one = supcon_loss(features, labels=labels, contrast_mode='one',
                           compute_dtype=jnp.float32)
    loss_mask = supcon_loss(features, mask=explicit_mask,
                            compute_dtype=jnp.float32)
    jax.block_until_ready((loss_sup, loss_unsup, loss_one, loss_mask))

    ref_sup = _supcon_loss_ref(features, labels=labels)
    ref_unsup = _supcon_loss_ref(features)
    ref_one = _supcon_loss_ref(features, labels=labels, contrast_mode='one')

    assert jnp.allclose(loss_sup, ref_sup, rtol=1e-5, atol=1e-5), (loss_sup, ref_sup)
    assert jnp.allclose(loss_unsup, ref_unsup, rtol=1e-5, atol=1e-5), (loss_unsup, ref_unsup)
    assert jnp.allclose(loss_one, ref_one, rtol=1e-5, atol=1e-5), (loss_one, ref_one)
    assert jnp.allclose(loss_mask, ref_sup, rtol=1e-5, atol=1e-5), (loss_mask, ref_sup)

    # ---- default bf16 matmul fast path: loose check ----
    loss_bf16 = supcon_loss(features, labels=labels)   # compute_dtype=bfloat16
    jax.block_until_ready(loss_bf16)
    assert jnp.allclose(loss_bf16, ref_sup, rtol=5e-2, atol=1e-1), (loss_bf16, ref_sup)

    # ---- exercise the online (contrast-tiled) log-sum-exp path ----
    bsz2 = 96
    feats2 = jax.random.normal(jax.random.PRNGKey(1), (bsz2, n_views, dim),
                               dtype=jnp.float32)
    feats2 = feats2 / jnp.linalg.norm(feats2, axis=-1, keepdims=True)
    labels2 = jnp.arange(bsz2, dtype=jnp.int32) % 5
    loss_tiled = supcon_loss(feats2, labels=labels2, compute_dtype=jnp.float32,
                             block_a=64, block_n=128)   # 3 anchor x 2 contrast tiles
    jax.block_until_ready(loss_tiled)
    ref_tiled = _supcon_loss_ref(feats2, labels=labels2)
    assert jnp.allclose(loss_tiled, ref_tiled, rtol=1e-4, atol=1e-4), (
        loss_tiled, ref_tiled)

    print("KERNEL_OK")
</pallas_src>

<mosaic_0001>
module attributes {stable_mosaic.version = 11 : i64} {
  func.func @_supcon_kernel_labels(%arg0: i32, %arg1: i32, %arg2: memref<8x128xf32, #tpu.memory_space<vmem>>, %arg3: memref<128x128xf32, #tpu.memory_space<vmem>>, %arg4: memref<8x1xi32, #tpu.memory_space<vmem>>, %arg5: memref<1x128xi32, #tpu.memory_space<vmem>>, %arg6: memref<1x8x128xf32, #tpu.memory_space<vmem>>, %arg7: memref<1x8x128xf32, #tpu.memory_space<vmem>>, %arg8: memref<8x1xf32, #tpu.memory_space<vmem>>, %arg9: memref<8x1xf32, #tpu.memory_space<vmem>>, %arg10: memref<8x1xf32, #tpu.memory_space<vmem>>, %arg11: memref<8x1xf32, #tpu.memory_space<vmem>>) attributes {dimension_semantics = [#tpu.dimension_semantics<parallel>, #tpu.dimension_semantics<arbitrary>], iteration_bounds = array<i64: 2, 1>, scalar_prefetch = 0 : i64, scratch_operands = 4 : i64, tpu.core_type = #tpu.core_type<tc>, window_params = [{transform_indices = @transform_0, window_bounds = array<i64: 8, 128>}, {transform_indices = @transform_1, window_bounds = array<i64: 128, 128>}, {transform_indices = @transform_2, window_bounds = array<i64: 8, 1>}, {transform_indices = @transform_3, window_bounds = array<i64: 1, 128>}, {transform_indices = @transform_4, window_bounds = array<i64: 1, 8, 128>}, {transform_indices = @transform_5, window_bounds = array<i64: 1, 8, 128>}]} {
    %c0 = arith.constant 0 : index
    %c0_0 = arith.constant 0 : index
    %0 = vector.load %arg2[%c0, %c0_0] : memref<8x128xf32, #tpu.memory_space<vmem>>, vector<8x128xf32>
    %c0_1 = arith.constant 0 : index
    %c0_2 = arith.constant 0 : index
    %1 = vector.load %arg3[%c0_1, %c0_2] : memref<128x128xf32, #tpu.memory_space<vmem>>, vector<128x128xf32>
    %cst = arith.constant dense<0.000000e+00> : vector<8x128xf32>
    %2 = tpu.matmul %0, %1, %cst {dimension_numbers = #tpu.dot_dimension_numbers<[1], [0], [0], [1], [0, 0, 1, 1], [], []>} : vector<8x128xf32>, vector<128x128xf32>, vector<8x128xf32> -> vector<8x128xf32>
    %c8_i32 = arith.constant 8 : i32
    %3 = arith.muli %arg0, %c8_i32 : i32
    %4 = tpu.iota {dimensions = array<i32: 0>} : vector<8x1xi32>
    %5 = vector.broadcast %3 : i32 to vector<8x1xi32>
    %6 = arith.addi %5, %4 : vector<8x1xi32>
    %c128_i32 = arith.constant 128 : i32
    %7 = arith.muli %arg1, %c128_i32 : i32
    %8 = tpu.iota {dimensions = array<i32: 1>} : vector<1x128xi32>
    %9 = vector.broadcast %7 : i32 to vector<1x128xi32>
    %10 = arith.addi %9, %8 : vector<1x128xi32>
    %c16_i32 = arith.constant 16 : i32
    %11 = vector.broadcast %c16_i32 : i32 to vector<1x128xi32>
    %12 = arith.cmpi slt, %10, %11 : vector<1x128xi32>
    %13 = vector.broadcast %6 : vector<8x1xi32> to vector<8x128xi32>
    %14 = vector.broadcast %10 : vector<1x128xi32> to vector<8x128xi32>
    %15 = arith.cmpi ne, %13, %14 : vector<8x128xi32>
    %16 = vector.broadcast %12 : vector<1x128xi1> to vector<8x128xi1>
    %17 = arith.andi %16, %15 : vector<8x128xi1>
    %c0_3 = arith.constant 0 : index
    %c0_4 = arith.constant 0 : index
    %18 = vector.load %arg4[%c0_3, %c0_4] : memref<8x1xi32, #tpu.memory_space<vmem>>, vector<8x1xi32>
    %c0_5 = arith.constant 0 : index
    %c0_6 = arith.constant 0 : index
    %19 = vector.load %arg5[%c0_5, %c0_6] : memref<1x128xi32, #tpu.memory_space<vmem>>, vector<1x128xi32>
    %20 = vector.broadcast %18 : vector<8x1xi32> to vector<8x128xi32>
    %21 = vector.broadcast %19 : vector<1x128xi32> to vector<8x128xi32>
    %22 = arith.cmpi eq, %20, %21 : vector<8x128xi32>
    %23 = arith.andi %22, %17 : vector<8x128xi1>
    %c0_i32 = arith.constant 0 : i32
    %24 = arith.cmpi eq, %arg1, %c0_i32 : i32
    %25 = arith.extui %24 : i1 to i32
    %c0_i32_7 = arith.constant 0 : i32
    %26 = arith.cmpi ne, %25, %c0_i32_7 : i32
    scf.if %26 {
      %cst_35 = arith.constant -1.000000e+30 : f32
      %65 = vector.broadcast %cst_35 : f32 to vector<8x1xf32>
      %c0_36 = arith.constant 0 : index
      %c0_37 = arith.constant 0 : index
      %66 = vector.load %arg8[%c0_36, %c0_37] : memref<8x1xf32, #tpu.memory_space<vmem>>, vector<8x1xf32>
      tpu.vector_store %arg8[%c0_36, %c0_37], %65 {strides = array<i32>} : memref<8x1xf32, #tpu.memory_space<vmem>>, vector<8x1xf32>,
      %cst_38 = arith.constant 0.000000e+00 : f32
      %67 = vector.broadcast %cst_38 : f32 to vector<8x1xf32>
      %c0_39 = arith.constant 0 : index
      %c0_40 = arith.constant 0 : index
      %68 = vector.load %arg9[%c0_39, %c0_40] : memref<8x1xf32, #tpu.memory_space<vmem>>, vector<8x1xf32>
      tpu.vector_store %arg9[%c0_39, %c0_40], %67 {strides = array<i32>} : memref<8x1xf32, #tpu.memory_space<vmem>>, vector<8x1xf32>,
      %cst_41 = arith.constant 0.000000e+00 : f32
      %69 = vector.broadcast %cst_41 : f32 to vector<8x1xf32>
      %c0_42 = arith.constant 0 : index
      %c0_43 = arith.constant 0 : index
      %70 = vector.load %arg10[%c0_42, %c0_43] : memref<8x1xf32, #tpu.memory_space<vmem>>, vector<8x1xf32>
      tpu.vector_store %arg10[%c0_42, %c0_43], %69 {strides = array<i32>} : memref<8x1xf32, #tpu.memory_space<vmem>>, vector<8x1xf32>,
      %cst_44 = arith.constant 0.000000e+00 : f32
      %71 = vector.broadcast %cst_44 : f32 to vector<8x1xf32>
      %c0_45 = arith.constant 0 : index
      %c0_46 = arith.constant 0 : index
      %72 = vector.load %arg11[%c0_45, %c0_46] : memref<8x1xf32, #tpu.memory_space<vmem>>, vector<8x1xf32>
      tpu.vector_store %arg11[%c0_45, %c0_46], %71 {strides = array<i32>} : memref<8x1xf32, #tpu.memory_space<vmem>>, vector<8x1xf32>,
    } else {
    }
    %cst_8 = arith.constant -1.000000e+30 : f32
    %27 = vector.broadcast %cst_8 : f32 to vector<8x128xf32>
    %28 = arith.select %17, %2, %27 : vector<8x128xi1>, vector<8x128xf32>
    %cst_9 = arith.constant dense<0xFF800000> : vector<8xf32>
    %29 = vector.multi_reduction <maximumf>, %28, %cst_9 [1] : vector<8x128xf32> to vector<8xf32>
    %30 = vector.shape_cast %29 : vector<8xf32> to vector<8x1xf32>
    %c0_10 = arith.constant 0 : index
    %c0_11 = arith.constant 0 : index
    %31 = vector.load %arg8[%c0_10, %c0_11] : memref<8x1xf32, #tpu.memory_space<vmem>>, vector<8x1xf32>
    %32 = arith.maximumf %31, %30 : vector<8x1xf32>
    %c0_12 = arith.constant 0 : index
    %c0_13 = arith.constant 0 : index
    %33 = vector.load %arg8[%c0_12, %c0_13] : memref<8x1xf32, #tpu.memory_space<vmem>>, vector<8x1xf32>
    %34 = arith.subf %33, %32 : vector<8x1xf32>
    %35 = math.exp %34 : vector<8x1xf32>
    %36 = vector.broadcast %32 : vector<8x1xf32> to vector<8x128xf32>
    %37 = arith.subf %28, %36 : vector<8x128xf32>
    %38 = math.exp %37 : vector<8x128xf32>
    %cst_14 = arith.constant 0.000000e+00 : f32
    %39 = vector.broadcast %cst_14 : f32 to vector<8x128xf32>
    %40 = arith.select %17, %38, %39 : vector<8x128xi1>, vector<8x128xf32>
    %c0_15 = arith.constant 0 : index
    %c0_16 = arith.constant 0 : index
    %41 = vector.load %arg9[%c0_15, %c0_16] : memref<8x1xf32, #tpu.memory_space<vmem>>, vector<8x1xf32>
    %42 = arith.mulf %35, %41 : vector<8x1xf32>
    %cst_17 = arith.constant dense<0.000000e+00> : vector<8xf32>
    %43 = vector.multi_reduction <add>, %40, %cst_17 [1] : vector<8x128xf32> to vector<8xf32>
    %44 = vector.shape_cast %43 : vector<8xf32> to vector<8x1xf32>
    %45 = arith.addf %42, %44 : vector<8x1xf32>
    %c0_18 = arith.constant 0 : index
    %c0_19 = arith.constant 0 : index
    %46 = vector.load %arg9[%c0_18, %c0_19] : memref<8x1xf32, #tpu.memory_space<vmem>>, vector<8x1xf32>
    tpu.vector_store %arg9[%c0_18, %c0_19], %45 {strides = array<i32>} : memref<8x1xf32, #tpu.memory_space<vmem>>, vector<8x1xf32>,
    %c0_20 = arith.constant 0 : index
    %c0_21 = arith.constant 0 : index
    %47 = vector.load %arg8[%c0_20, %c0_21] : memref<8x1xf32, #tpu.memory_space<vmem>>, vector<8x1xf32>
    tpu.vector_store %arg8[%c0_20, %c0_21], %32 {strides = array<i32>} : memref<8x1xf32, #tpu.memory_space<vmem>>, vector<8x1xf32>,
    %c0_22 = arith.constant 0 : index
    %c0_23 = arith.constant 0 : index
    %48 = vector.load %arg10[%c0_22, %c0_23] : memref<8x1xf32, #tpu.memory_space<vmem>>, vector<8x1xf32>
    %49 = arith.extui %23 : vector<8x128xi1> to vector<8x128xi32>
    %50 = arith.sitofp %49 : vector<8x128xi32> to vector<8x128xf32>
    %cst_24 = arith.constant dense<0.000000e+00> : vector<8xf32>
    %51 = vector.multi_reduction <add>, %50, %cst_24 [1] : vector<8x128xf32> to vector<8xf32>
    %52 = vector.shape_cast %51 : vector<8xf32> to vector<8x1xf32>
    %53 = arith.addf %48, %52 : vector<8x1xf32>
    %c0_25 = arith.constant 0 : index
    %c0_26 = arith.constant 0 : index
    %54 = vector.load %arg10[%c0_25, %c0_26] : memref<8x1xf32, #tpu.memory_space<vmem>>, vector<8x1xf32>
    tpu.vector_store %arg10[%c0_25, %c0_26], %53 {strides = array<i32>} : memref<8x1xf32, #tpu.memory_space<vmem>>, vector<8x1xf32>,
    %c0_27 = arith.constant 0 : index
    %c0_28 = arith.constant 0 : index
    %55 = vector.load %arg11[%c0_27, %c0_28] : memref<8x1xf32, #tpu.memory_space<vmem>>, vector<8x1xf32>
    %cst_29 = arith.constant 0.000000e+00 : f32
    %56 = vector.broadcast %cst_29 : f32 to vector<8x128xf32>
    %57 = arith.select %23, %2, %56 : vector<8x128xi1>, vector<8x128xf32>
    %cst_30 = arith.constant dense<0.000000e+00> : vector<8xf32>
    %58 = vector.multi_reduction <add>, %57, %cst_30 [1] : vector<8x128xf32> to vector<8xf32>
    %59 = vector.shape_cast %58 : vector<8xf32> to vector<8x1xf32>
    %60 = arith.addf %55, %59 : vector<8x1xf32>
    %c0_31 = arith.constant 0 : index
    %c0_32 = arith.constant 0 : index
    %61 = vector.load %arg11[%c0_31, %c0_32] : memref<8x1xf32, #tpu.memory_space<vmem>>, vector<8x1xf32>
    tpu.vector_store %arg11[%c0_31, %c0_32], %60 {strides = array<i32>} : memref<8x1xf32, #tpu.memory_space<vmem>>, vector<8x1xf32>,
    %c0_i32_33 = arith.constant 0 : i32
    %62 = arith.cmpi eq, %arg1, %c0_i32_33 : i32
    %63 = arith.extui %62 : i1 to i32
    %c0_i32_34 = arith.constant 0 : i32
    %64 = arith.cmpi ne, %63, %c0_i32_34 : i32
    scf.if %64 {
      %c0_35 = arith.constant 0 : index
      %c0_36 = arith.constant 0 : index
      %65 = vector.load %arg10[%c0_35, %c0_36] : memref<8x1xf32, #tpu.memory_space<vmem>>, vector<8x1xf32>
      %c0_37 = arith.constant 0 : index
      %c0_38 = arith.constant 0 : index
      %66 = vector.load %arg11[%c0_37, %c0_38] : memref<8x1xf32, #tpu.memory_space<vmem>>, vector<8x1xf32>
      %cst_39 = arith.constant 1.000000e+00 : f32
      %67 = vector.broadcast %cst_39 : f32 to vector<8x1xf32>
      %68 = arith.maximumf %65, %67 : vector<8x1xf32>
      %69 = arith.divf %66, %68 : vector<8x1xf32>
      %c0_40 = arith.constant 0 : index
      %c0_41 = arith.constant 0 : index
      %70 = vector.load %arg8[%c0_40, %c0_41] : memref<8x1xf32, #tpu.memory_space<vmem>>, vector<8x1xf32>
      %71 = arith.subf %69, %70 : vector<8x1xf32>
      %c0_42 = arith.constant 0 : index
      %c0_43 = arith.constant 0 : index
      %72 = vector.load %arg9[%c0_42, %c0_43] : memref<8x1xf32, #tpu.memory_space<vmem>>, vector<8x1xf32>
      %cst_44 = arith.constant 1.000000e-30 : f32
      %73 = vector.broadcast %cst_44 : f32 to vector<8x1xf32>
      %74 = arith.maximumf %72, %73 : vector<8x1xf32>
      %75 = math.log %74 : vector<8x1xf32>
      %76 = arith.subf %71, %75 : vector<8x1xf32>
      %c16_i32_45 = arith.constant 16 : i32
      %77 = vector.broadcast %c16_i32_45 : i32 to vector<8x1xi32>
      %78 = arith.cmpi slt, %6, %77 : vector<8x1xi32>
      %cst_46 = arith.constant 0.000000e+00 : f32
      %79 = vector.broadcast %cst_46 : f32 to vector<8x1xf32>
      %80 = arith.cmpf ogt, %65, %79 : vector<8x1xf32>
      %81 = arith.andi %78, %80 : vector<8x1xi1>
      %82 = arith.extui %81 : vector<8x1xi1> to vector<8x1xi32>
      %83 = arith.sitofp %82 : vector<8x1xi32> to vector<8x1xf32>
      %cst_47 = arith.constant -1.000000e+00 : f32
      %84 = vector.broadcast %cst_47 : f32 to vector<8x1xf32>
      %85 = arith.mulf %84, %76 : vector<8x1xf32>
      %86 = arith.mulf %85, %83 : vector<8x1xf32>
      %87 = vector.shape_cast %86 : vector<8x1xf32> to vector<1x8x1xf32>
      %cst_48 = arith.constant dense<0.000000e+00> : vector<1xf32>
      %88 = vector.multi_reduction <add>, %87, %cst_48 [1, 2] : vector<1x8x1xf32> to vector<1xf32>
      %89 = vector.shape_cast %88 : vector<1xf32> to vector<1x1x1xf32>
      %90 = vector.extract %89[0, 0, 0] : f32 from vector<1x1x1xf32>
      %91 = vector.broadcast %90 : f32 to vector<1x8x128xf32>
      %c0_49 = arith.constant 0 : index
      %c0_50 = arith.constant 0 : index
      %c0_51 = arith.constant 0 : index
      %92 = vector.load %arg6[%c0_49, %c0_50, %c0_51] : memref<1x8x128xf32, #tpu.memory_space<vmem>>, vector<1x8x128xf32>
      tpu.vector_store %arg6[%c0_49, %c0_50, %c0_51], %91 {strides = array<i32>} : memref<1x8x128xf32, #tpu.memory_space<vmem>>, vector<1x8x128xf32>,
      %93 = vector.shape_cast %83 : vector<8x1xf32> to vector<1x8x1xf32>
      %cst_52 = arith.constant dense<0.000000e+00> : vector<1xf32>
      %94 = vector.multi_reduction <add>, %93, %cst_52 [1, 2] : vector<1x8x1xf32> to vector<1xf32>
      %95 = vector.shape_cast %94 : vector<1xf32> to vector<1x1x1xf32>
      %96 = vector.extract %95[0, 0, 0] : f32 from vector<1x1x1xf32>
      %97 = vector.broadcast %96 : f32 to vector<1x8x128xf32>
      %c0_53 = arith.constant 0 : index
      %c0_54 = arith.constant 0 : index
      %c0_55 = arith.constant 0 : index
      %98 = vector.load %arg7[%c0_53, %c0_54, %c0_55] : memref<1x8x128xf32, #tpu.memory_space<vmem>>, vector<1x8x128xf32>
      tpu.vector_store %arg7[%c0_53, %c0_54, %c0_55], %97 {strides = array<i32>} : memref<1x8x128xf32, #tpu.memory_space<vmem>>, vector<1x8x128xf32>,
    } else {
    }
    return
  }
  func.func @transform_0(%arg0: i32, %arg1: i32) -> (i32, i32) {
    %c0_i32 = arith.constant 0 : i32
    %c0_i32_0 = arith.constant 0 : i32
    return %arg0, %c0_i32 : i32, i32
  }
  func.func @transform_1(%arg0: i32, %arg1: i32) -> (i32, i32) {
    %c0_i32 = arith.constant 0 : i32
    %c0_i32_0 = arith.constant 0 : i32
    return %c0_i32, %arg1 : i32, i32
  }
  func.func @transform_2(%arg0: i32, %arg1: i32) -> (i32, i32) {
    %c0_i32 = arith.constant 0 : i32
    %c0_i32_0 = arith.constant 0 : i32
    return %arg0, %c0_i32 : i32, i32
  }
  func.func @transform_3(%arg0: i32, %arg1: i32) -> (i32, i32) {
    %c0_i32 = arith.constant 0 : i32
    %c0_i32_0 = arith.constant 0 : i32
    return %c0_i32, %arg1 : i32, i32
  }
  func.func @transform_4(%arg0: i32, %arg1: i32) -> (i32, i32, i32) {
    %c0_i32 = arith.constant 0 : i32
    %c0_i32_0 = arith.constant 0 : i32
    %c0_i32_1 = arith.constant 0 : i32
    return %arg0, %c0_i32, %c0_i32_0 : i32, i32, i32
  }
  func.func @transform_5(%arg0: i32, %arg1: i32) -> (i32, i32, i32) {
    %c0_i32 = arith.constant 0 : i32
    %c0_i32_0 = arith.constant 0 : i32
    %c0_i32_1 = arith.constant 0 : i32
    return %arg0, %c0_i32, %c0_i32_0 : i32, i32, i32
  }
}

</mosaic_0001>

<bundles_post_ra>
// kernel: tpu_custom_call.1
= control target key start
LH: loop header
LB: loop body
LE: loop exit
PB: predicated region body
PF: predicated region fallthrough
CT: control target
= control target key end

     0   :  { %s1268_s0 = inlined_call_operand.vmem [shape: f32[16,128], index: 0, kind: input, shape index: {}]   ;;  %s1269_s1 = inlined_call_operand.hbm [shape: f32[128,128], index: 1, kind: input, shape index: {}]   ;;  %s1270_s2 = inlined_call_operand.vmem [shape: s32[16,1], index: 2, kind: input, shape index: {}]   ;;  %s1271_s3 = inlined_call_operand.vmem [shape: s32[1,128], index: 3, kind: input, shape index: {}]   ;;  %s1272_s4 = inlined_call_operand.hbm [shape: f32[2,8,128], index: 4, kind: output, shape index: {0}]   ;;  %s1273_s5 = inlined_call_operand.hbm [shape: f32[2,8,128], index: 5, kind: output, shape index: {1}]  }
   0x1   :  { %1278 = sst [smem:[#allocation15_spill]] %s1268_s0 }
   0x2   :  { %11 = vsyncpa [#allocation7], 0 }
   0x3   :  { %12 = vsyncpa [#allocation8], 0 }
   0x4   :  { %14 = vsyncpa [#allocation8 + $0x1], 0 }
   0x5   :  { %15 = vsyncpa [#allocation11], 0 }
   0x6   :  { %17 = vsyncpa [#allocation11 + $0x1], 0  ;;  %s1045_s18 = smov 0   ;;  %s1047_s19 = smov 0  }
   0x7   :  { %s1049_s20 = smov 0   ;;  %s1051_s21 = smov 0  }
   0x8   :  { %s1053_s22 = smov 0   ;;  %s1055_s23 = smov 0  }
   0x9 LB: > { %s671_s24 = sadd.s32 4294967295, %s1003_s23   ;;  %s672_s25 = sadd.s32 4294967294, %s1003_s23   ;;  %s1003_s23 = sphi %s1055_s23, %s23_s23   ;;  %s999_s22 = sphi %s1053_s22, %s1295_s22   ;;  %s995_s21 = sphi %s1051_s21, %s1294_s21   ;;  %s991_s20 = sphi %s1049_s20, %s1293_s20   ;;  %s987_s19 = sphi %s1047_s19, %s1292_s19   ;;  %s983_s18 = sphi %s1045_s18, %s1291_s18  }
   0xa   : > { %s35_s26 = sadd.s32 1, %s999_s22  ;;  %s146_s27 = sadd.s32 1, %s991_s20 }
   0xb   : > { %p37_p0 = scmp.ge.s32.totalorder %s35_s26, 2  ;;  %p156_p1 = scmp.ne.s32.totalorder %s991_s20, %s987_s19 }
   0xc   : > { %p157_p2 = scmp.eq.s32.totalorder %s671_s24, 1  ;;  %p162_p3 = scmp.ne.s32.totalorder %s987_s19, %s983_s18 }
   0xd   : > { %s1297_s26 = smov (%p37_p0, %s35_s26), 0  ;;  %p163_p5 = scmp.eq.s32.totalorder %s672_s25, 1 }
   0xe   : > { %p1085_p4 = por %p157_p2, %p156_p1  ;;  %s143_s29 = ssub.s32 %s999_s22, %s1297_s26 }
   0xf   : > { %p673_p6 = scmp.ge.s32.totalorder %s1003_s23, 1  ;;  %p144_p7 = scmp.eq.s32.totalorder %s143_s29, 0 }
  0x10   : > { %s1279_s28 = scalar_select %p1085_p4, 1, 0 }
  0x11   : > { %p1092_p8 = por %p163_p5, %p162_p3  ;;  %p196_p9 = scmp.lt.s32.totalorder %s1003_s23, 3 }
  0x12   : > { %s1098_s6 = scalar_select %p144_p7, %s991_s20, %s146_s27  }
  0x13   : > { %s1280_s30 = scalar_select %p1092_p8, 1, 0 }
  0x14   : > { %p1100_p10 = pnand %p673_p6, %p196_p9  ;;  %p1104_p11 = scmp.eq.s32.totalorder %s671_s24, 0 }
  0x15   : > { %s1005_s9 = smov [#allocation6]   ;;  %s861_s14 = scalar_lea.hbm %s1269_s1, 2048 }
  0x16   : > { %s1281_s7 = scalar_select %p1100_p10, 1, 0 }
  0x17   : > { %s1282_s8 = scalar_select %p1104_p11, 1, 0 }
  0x18   : > { %p781_p12 = pneg %p1100_p10  ;;  %s210_s10 = sshll.u32 %s1005_s9, 4  ;;  %s211_s10 = int_to_ptr.vmem [resolvable:$true] %s210_s10 }
  0x19   : > { %p862_p0 = scmp.ne.s32.totalorder %s1269_s1, %s861_s14  ;;  %p868_p5 = scmp.lt.u32.totalorder %s861_s14, %s1269_s1 }
  0x1a   : > { %p1112_p13 = pnand %p1104_p11, %p781_p12 }
  0x1c   : > { %p863_p1 = pneg %p1112_p13 }
  0x1e   : > { %p864_p2 = pnand %p863_p1, %p862_p0 }
  0x20   : > { %p865_p3 = pneg %p864_p2 }
  0x22   : > { %p870_p6 = pnand %p868_p5, %p865_p3 }
  0x24   : > { %873 = shalt.err (!%p870_p6)
}
  0x25   : > { %s874_s25 = scalar_lea.vmem %s211_s10, 2048  ;;  %p882_p8 = scmp.lt.s32.totalorder %s211_s10, %s211_s10 }
  0x26   : > { %p875_p7 = scmp.ne.s32.totalorder %s211_s10, %s874_s25  ;;  %p883_p4 = scmp.lt.s32.totalorder %s874_s25, %s874_s25 }
  0x28   : > { %p877_p9 = pnand %p875_p7, %p863_p1  ;;  %p884_p11 = por %p883_p4, %p882_p8 }
  0x2a   : > { %p878_p12 = pneg %p877_p9 }
  0x2c   : > { %p885_p10 = pnand %p884_p11, %p878_p12 }
  0x2e   : > { %888 = shalt.err (!%p885_p10)
}
  0x2f   : > { %s1006_s27 = smov 128   ;;  %s1007_s29 = smov 8  }
  0x30   : > { %784 = dma.hbm_to_vmem [thread:$0]  (!%p1112_p13), %s1269_s1, 2048, %s211_s10, [#allocation7], %s1006_s27, %s1006_s27, %s1007_s29  }
  0x31   : > { %p1284_p0 = scmp.ne.s32.totalorder %s1281_s7, 0 }
  0x32   : > { %p1285_p2 = scmp.ne.s32.totalorder (!%p1284_p0), %s1282_s8, 0 }
  0x33   : > { %246 = sbr.rel (%p1284_p0) target bundleno = 1012 (0x3f4), region = 36 }
  0x3a   : > { %970 = dma.done.wait (%p1285_p2), [#allocation7], 2048  }
  0x3b   : > { %972 = vsyncadd (%p1285_p2), [#allocation7], 4294965248  ;;  %p285_p4 = scmp.lt.s32.totalorder %s995_s21, 1  ;;  %v1008_v0 = vmov 0.0|0.0   ;;  %vm1009_vm0 = vmmov 0   ;;  %v1010_v1 = vmov 0.0   ;;  %v384_v30 = vlaneseq }
  0x3c   : > { %745 = vmatprep.subr.bf16.mxu0 %v1008_v0  ;;  %742 = vmatprep.mubr.msk.f32.mxu0 %vm1009_vm0, %v1010_v1  ;;  %v1011_v2 = vmov 0   ;;  %v297_v3 = vld [vmem:[#allocation6] sm:$0xff]  ;;  %v298_v4 = vld [vmem:[#allocation6 + $0x8] sm:$0xff]  ;;  %v299_v5 = vld [vmem:[#allocation6 + $0x10] sm:$0xff]  ;;  %s1286_s0 = sld [smem:[#allocation15_spill]]  ;;  %vm413_vm1 = vcmask 7168  }
  0x3d   : > { %852 = vset.pattern.permute.xlu1 %v1011_v2  ;;  %851 = vset.pattern.permute.xlu0 %v1011_v2  ;;  %s1141_s7 = scalar_select %p285_p4, %s995_s21, 1  ;;  %v746_v6 = vpack.c.bf16 %v298_v4, %v297_v3  ;;  %v300_v7 = vld [vmem:[#allocation6 + $0x18] sm:$0xff]  ;;  %v301_v9 = vld [vmem:[#allocation6 + $0x20] sm:$0xff]  ;;  %v302_v10 = vld [vmem:[#allocation6 + $0x28] sm:$0xff]  ;;  %v1012_v29 = vmov -1e+30  }
  0x3e   : > { %v749_v8 = vpack.c.bf16 %v300_v7, %v299_v5  ;;  %v752_v12 = vpack.c.bf16 %v302_v10, %v301_v9  ;;  %v303_v13 = vld [vmem:[#allocation6 + $0x30] sm:$0xff]  ;;  %v304_v14 = vld [vmem:[#allocation6 + $0x38] sm:$0xff]  ;;  %v305_v16 = vld [vmem:[#allocation6 + $0x40] sm:$0xff]  ;;  %414 = vst.msk [vmem:[#allocation2] sm:$0xff] %vm413_vm1, %v1012_v29  ;;  %s683_s17 = sshll.u32 %s995_s21, 3  ;;  %v385_v31 = vshrl.u32 %v384_v30, 7 }
  0x3f   : > { %s681_s8 = sshll.u32 %s1141_s7, 3  ;;  %747 = vmatpush3.bf16.msra.mxu0 %v746_v6  ;;  %v755_v15 = vpack.c.bf16 %v304_v14, %v303_v13  ;;  %v306_v17 = vld [vmem:[#allocation6 + $0x48] sm:$0xff]  ;;  %v307_v19 = vld [vmem:[#allocation6 + $0x50] sm:$0xff]  ;;  %v308_v20 = vld [vmem:[#allocation6 + $0x58] sm:$0xff]  ;;  %415 = vst.msk [vmem:[#allocation3] sm:$0xff] %vm413_vm1, %v1010_v1  ;;  %v386_v32 = vstv %s683_s17  ;;  %v390_v34 = vand.u32 127, %v384_v30 }
  0x40   : > { %s292_s13 = scalar_lea.vmem %s1270_s2, %s681_s8  ;;  %748 = vmatprep.subr.bf16.mxu0 %v1008_v0  ;;  %v758_v18 = vpack.c.bf16 %v306_v17, %v305_v16  ;;  %v761_v21 = vpack.c.bf16 %v308_v20, %v307_v19  ;;  %v309_v22 = vld [vmem:[#allocation6 + $0x60] sm:$0xff]  ;;  %v310_v23 = vld [vmem:[#allocation6 + $0x68] sm:$0xff]  ;;  %v311_v25 = vld [vmem:[#allocation6 + $0x70] sm:$0xff]  ;;  %416 = vst.msk [vmem:[#allocation4] sm:$0xff] %vm413_vm1, %v1010_v1  ;;  %v387_v33 = vadd.s32 %v386_v32, %v385_v31  ;;  %s1184_s27 = sand.u32 1, %s987_s19  }
  0x41   : > { %v398_v11 = vld [vmem:[%s292_s13] sm:$0xff]  ;;  %v764_v24 = vpack.c.bf16 %v310_v23, %v309_v22  ;;  %v312_v26 = vld [vmem:[#allocation6 + $0x78] sm:$0xff]  ;;  %417 = vst.msk [vmem:[#allocation5] sm:$0xff] %vm413_vm1, %v1010_v1  ;;  %vm393_vm2 = vcmp.lt.s32.totalorder %v390_v34, 16  ;;  %s679_s29 = sshll.u32 %s1184_s27, 3  ;;  %s689_s7 = sshll.u32 %s995_s21, 7 }
  0x42   : > { %401 = vperm.xlu1 %852, %v398_v11   ;;  %v767_v27 = vpack.c.bf16 %v312_v26, %v311_v25  ;;  %s288_s16 = scalar_lea.vmem %s1286_s0, %s681_s8  ;;  %vm394_vm3 = vcmp.ne.s32.totalorder %v387_v33, %v390_v34  ;;  %v684_v40 = vld [vmem:[%s1271_s3] ss:$0 sm:$0xff]  ;;  %vm471_vm7 = vcmp.lt.s32.totalorder %v387_v33, 16  ;;  %s284_s9 = scalar_lea.vmem [#allocation10], %s679_s29 }
  0x43   : > { %750 = vmatpush3.bf16.msra.mxu0 %v749_v8  ;;  %v296_v28 = vld [vmem:[%s288_s16] sm:$0xff]  ;;  %vm1162_vm4 = vmand %vm393_vm2, %vm394_vm3  ;;  %s534_s12 = sshll.u32 %s284_s9, 4  ;;  %s277_s8 = scalar_lea.vmem [#allocation9], %s679_s29  ;;  %s1188_s12 = int_to_ptr.vmem [resolvable:$true] %s534_s12 }
  0x44   : > { %751 = vmatprep.subr.bf16.mxu0 %v1008_v0  ;;  %s521_s10 = sshll.u32 %s277_s8, 4  ;;  %s1193_s14 = scalar_lea.hbm %s1272_s4, %s689_s7  ;;  %s1195_s10 = int_to_ptr.vmem [resolvable:$true] %s521_s10 }
  0x45   : > { %v421_v39 = vld [vmem:[#allocation2] sm:$0xff]  ;;  %s1200_s24 = scalar_lea.hbm %s1273_s5, %s689_s7  ;;  %s503_s25 = scalar_lea.sflag [#allocation8], %s1184_s27 }
  0x46   : > { %v435_v60 = vld [vmem:[#allocation3] sm:$0xff]  ;;  %s889_s29 = scalar_lea.vmem %s1195_s10, 128  ;;  %p1289_p10 = scmp.ne.s32.totalorder %s1279_s28, 0 }
  0x47   : > { %753 = vmatpush3.bf16.msra.mxu0 %v752_v12  ;;  %v443_v51 = vld [vmem:[#allocation4] sm:$0xff]  ;;  %p890_p8 = scmp.ne.s32.totalorder %s1195_s10, %s889_s29  ;;  %s1013_s11 = smov [#allocation9]  }
  0x48   : > { %754 = vmatprep.subr.bf16.mxu0 %v1008_v0  ;;  %s893_s13 = sshll.u32 %s1013_s11, 4  ;;  %s894_s13 = int_to_ptr.vmem [resolvable:$false] %s893_s13 }
  0x49   : > { %p891_p11 = pnand %p890_p8, %p1289_p10  ;;  %s895_s0 = scalar_lea.vmem %s894_s13, 256 }
  0x4a   : > { %p896_p1 = scmp.lt.s32.totalorder %s1195_s10, %s894_s13  ;;  %p897_p3 = scmp.lt.s32.totalorder %s895_s0, %s889_s29 }
  0x4b   : > { %756 = vmatpush3.bf16.msra.mxu0 %v755_v15  ;;  %p892_p13 = pneg %p891_p11 }
  0x4c   : > { %757 = vmatprep.subr.bf16.mxu0 %v1008_v0  ;;  %p898_p5 = por %p897_p3, %p896_p1 }
  0x4e   : > { %p899_p6 = pnand %p898_p5, %p892_p13 }
  0x4f   : > { %759 = vmatpush3.bf16.msra.mxu0 %v758_v18 }
  0x50   : > { %760 = vmatprep.subr.bf16.mxu0 %v1008_v0 }
  0x53   : > { %762 = vmatpush3.bf16.msra.mxu0 %v761_v21 }
  0x54   : > { %763 = vmatprep.subr.bf16.mxu0 %v1008_v0 }
  0x57   : > { %765 = vmatpush3.bf16.msra.mxu0 %v764_v24 }
  0x58   : > { %766 = vmatprep.subr.bf16.mxu0 %v1008_v0  ;;  %v450_v0 = vld [vmem:[#allocation5] sm:$0xff] }
  0x5b   : > { %768 = vmatpush3.bf16.msra.mxu0 %v767_v27 }
  0x5e   : > { %743 = vmatmul.mubr.f32.vlgmr.msra.gmra.mrb[0].mxu0 %v296_v28 }
  0xc1   : > { %v402_v41 = vpop.permute.xlu1 %401 }
  0xc2   : > { %vm407_vm5 = vcmp.eq.s32.totalorder %v402_v41, %v684_v40 }
  0xc3   : > { %vm408_vm6 = vmand %vm407_vm5, %vm1162_vm4 }
  0xc4   : > { %v685_v45 = vsel %vm408_vm6, 1.0, %v1010_v1 }
  0xc5   : > { %446 = vadd.xlane.f32.xlu1 %v685_v45 }
 0x131   : > { %v379_v36 = vpop.f32.mrb[0].mxu0 }
 0x132   : > { %v744_v37 = vpop.f32.mrb[1].mxu0  ;;  %v418_v38 = vsel %vm1162_vm4, %v379_v36, -1e+30  ;;  %v451_v53 = vsel %vm408_vm6, %v379_v36, 0.0 }
 0x133   : > { %419 = vmax.xlane.f32.xlu0 %v418_v38 }
 0x152   : > { %v447_v52 = vpop.xlane.xlu1 %446 }
 0x153   : > { %v448_v54 = vadd.f32 %v447_v52, %v443_v51 }
 0x155   : > { %449 = vst.msk [vmem:[#allocation4] sm:$0xff] %vm413_vm1, %v448_v54 }
 0x15c   : > { %v459_v55 = vld [vmem:[#allocation4] sm:$0xff] }
 0x15d   : > { %vm472_vm8 = vcmp.gt.f32.partialorder %v459_v55, 0.0  ;;  %v461_v2 = vmax.f32 %v459_v55, 1.0 }
 0x15e   : > { %vm473_vm9 = vmand %vm471_vm7, %vm472_vm8 }
 0x15f   : > { %v686_v56 = vsel %vm473_vm9, 1.0, %v1010_v1 }
 0x160   : > { %v490_v57 = vsel %vm413_vm1, %v686_v56, 0.0 }
 0x1c0   : > { %v420_v42 = vpop.xlane.xlu0 %419 }
 0x1c1   : > { %v422_v43 = vmax.f32 %v421_v39, %v420_v42 }
 0x1c3   : > { %v423_v44 = vsub.f32 %v421_v39, %v422_v43  ;;  %442 = vst.msk [vmem:[#allocation2] sm:$0xff] %vm413_vm1, %v422_v43  ;;  %428 = vperm.xlu0 %851, %v422_v43  }
 0x1c5   : > { %v424_v58 = vmul.f32 1.442695, %v423_v44 }
 0x1ca   : > { %v464_v10 = vld [vmem:[#allocation2] sm:$0xff] }
 0x242   : > { %v429_v46 = vpop.permute.xlu0 %428 }
 0x243   : > { %v431_v47 = vsub.f32 %v418_v38, %v429_v46 }
 0x245   : > { %v432_v48 = vmul.f32 1.442695, %v431_v47 }
 0x247   : > { %853 = vpow2.f32 %v432_v48 }
 0x248   : > { %855 = vpow2.f32 %v424_v58 }
 0x249   : > { %857 = vrcp.f32 %v461_v2 }
 0x251   : > { %v854_v49 = vpop.eup %853 }
 0x252   : > { %v434_v50 = vsel %vm1162_vm4, %v854_v49, 0.0  ;;  %v856_v59 = vpop.eup %855 }
 0x253   : > { %437 = vadd.xlane.f32.xlu1 %v434_v50  ;;  %v436_v61 = vmul.f32 %v856_v59, %v435_v60  ;;  %v858_v6 = vpop.eup %857 }
 0x257   : > { %452 = vadd.xlane.f32.xlu1 %v451_v53 }
 0x25b   : > { %491 = vadd.xlane.f32.xlu1 %v490_v57 }
 0x2e0   : > { %v438_v62 = vpop.xlane.xlu1 %437 }
 0x2e1   : > { %v439_v63 = vadd.f32 %v438_v62, %v436_v61 }
 0x2e3   : > { %441 = vst.msk [vmem:[#allocation3] sm:$0xff] %vm413_vm1, %v439_v63 }
 0x2e4   : > { %v453_v3 = vpop.xlane.xlu1 %452 }
 0x2e5   : > { %v454_v4 = vadd.f32 %v453_v3, %v450_v0 }
 0x2e7   : > { %455 = vst.msk [vmem:[#allocation5] sm:$0xff] %vm413_vm1, %v454_v4 }
 0x2e8   : > { %v492_v17 = vpop.xlane.xlu1 %491 }
 0x2e9   : > { %v493_v18 = vrot.slane %v492_v17, 4 }
 0x2ea   : > { %v466_v1 = vld [vmem:[#allocation3] sm:$0xff] }
 0x2eb   : > { %v467_v5 = vmax.f32 %v466_v1, 1e-30  ;;  %v494_v19 = vadd.f32 %v493_v18, %v492_v17 }
 0x2ed   : > { %859 = vlog2.f32 %v467_v5  ;;  %v495_v20 = vrot.slane %v494_v19, 2 }
 0x2ee   : > { %v460_v7 = vld [vmem:[#allocation5] sm:$0xff] }
 0x2ef   : > { %v463_v8 = vmul.f32 %v858_v6, %v460_v7  ;;  %v496_v24 = vadd.f32 %v495_v20, %v494_v19 }
 0x2f1   : > { %v465_v11 = vsub.f32 %v463_v8, %v464_v10  ;;  %v497_v27 = vrot.slane %v496_v24, 1 }
 0x2f3   : > { %v498_v30 = vadd.f32 %v497_v27, %v496_v24 }
 0x2f7   : > { %v860_v9 = vpop.eup %859 }
 0x2f8   : > { %v469_v12 = vmul.f32 0.6931472, %v860_v9 }
 0x2fa   : > { %v470_v13 = vsub.f32 %v465_v11, %v469_v12 }
 0x2fc   : > { %v476_v14 = vmul.f32 -1.0, %v470_v13 }
 0x2fe   : > { %v477_v15 = vmul.f32 %v686_v56, %v476_v14 }
 0x300   : > { %v478_v16 = vsel %vm413_vm1, %v477_v15, 0.0 }
 0x301   : > { %479 = vadd.xlane.f32.xlu0 %v478_v16 }
 0x38e   : > { %v480_v21 = vpop.xlane.xlu0 %479 }
 0x38f   : > { %v481_v22 = vrot.slane %v480_v21, 4 }
 0x391   : > { %v482_v23 = vadd.f32 %v481_v22, %v480_v21 }
 0x393   : > { %v483_v25 = vrot.slane %v482_v23, 2 }
 0x395   : > { %v484_v26 = vadd.f32 %v483_v25, %v482_v23 }
 0x397   : > { %v485_v28 = vrot.slane %v484_v26, 1 }
 0x399   : > { %v486_v29 = vadd.f32 %v485_v28, %v484_v26 }
 0x39b   : > { %769 = vpush %v486_v29 }
 0x39c   : > { %771 = vpush %v498_v30 }
 0x3cc   : > { %s770_s15 = spop %769 }
 0x3cd   : > { %v488_v31 = vstv %s770_s15  ;;  %s772_s16 = spop %771 }
 0x3ce   : > { %489 = vst [vmem:[%s277_s8] sm:$0xff] %v488_v31  ;;  %v500_v32 = vstv %s772_s16 }
 0x3cf   : > { %501 = vst [vmem:[%s284_s9] sm:$0xff] %v500_v32 }
 0x3d0   : > { %902 = shalt.err (!%p899_p6)
}
 0x3d1   : > { %s903_s9 = scalar_lea.hbm %s1193_s14, 128  ;;  %s907_s15 = scalar_lea.hbm %s1272_s4, 256 }
 0x3d2   : > { %p904_p7 = scmp.ne.s32.totalorder %s1193_s14, %s903_s9  ;;  %p908_p0 = scmp.lt.u32.totalorder %s1193_s14, %s1272_s4 }
 0x3d3   : > { %p909_p2 = scmp.lt.u32.totalorder %s907_s15, %s903_s9  ;;  %p911_p8 = scmp.lt.u32.totalorder %s903_s9, %s1193_s14 }
 0x3d4   : > { %p905_p9 = pnand %p904_p7, %p1289_p10 }
 0x3d5   : > { %p910_p4 = por %p909_p2, %p908_p0 }
 0x3d6   : > { %p906_p12 = pneg %p905_p9 }
 0x3d7   : > { %p912_p11 = por %p911_p8, %p910_p4 }
 0x3d9   : > { %p913_p13 = pnand %p912_p11, %p906_p12 }
 0x3db   : > { %916 = shalt.err (!%p913_p13)
}
 0x3dc   : > { %777 = dma.vmem_to_hbm [thread:$0]  (%p1289_p10), %s1195_s10, 128, %s1193_s14, %s503_s25  }
 0x3dd   : > { %s508_s0 = scalar_lea.sflag [#allocation11], %s1184_s27  ;;  %s917_s21 = scalar_lea.vmem %s1188_s12, 128 }
 0x3de   : > { %p918_p1 = scmp.ne.s32.totalorder %s1188_s12, %s917_s21  ;;  %s1014_s29 = smov [#allocation10]  }
 0x3df   : > { %s921_s11 = sshll.u32 %s1014_s29, 4  ;;  %s922_s11 = int_to_ptr.vmem [resolvable:$false] %s921_s11 }
 0x3e0   : > { %p919_p3 = pnand %p918_p1, %p1289_p10  ;;  %s923_s13 = scalar_lea.vmem %s922_s11, 256 }
 0x3e1   : > { %p924_p6 = scmp.lt.s32.totalorder %s1188_s12, %s922_s11  ;;  %p925_p7 = scmp.lt.s32.totalorder %s923_s13, %s917_s21 }
 0x3e2   : > { %p920_p5 = pneg %p919_p3 }
 0x3e3   : > { %p926_p9 = por %p925_p7, %p924_p6 }
 0x3e5   : > { %p927_p12 = pnand %p926_p9, %p920_p5 }
 0x3e7   : > { %930 = shalt.err (!%p927_p12)
}
 0x3e8   : > { %s931_s27 = scalar_lea.hbm %s1200_s24, 128  ;;  %s935_s25 = scalar_lea.hbm %s1273_s5, 256 }
 0x3e9   : > { %p932_p0 = scmp.ne.s32.totalorder %s1200_s24, %s931_s27  ;;  %p936_p8 = scmp.lt.u32.totalorder %s1200_s24, %s1273_s5 }
 0x3ea   : > { %p937_p11 = scmp.lt.u32.totalorder %s935_s25, %s931_s27  ;;  %p939_p1 = scmp.lt.u32.totalorder %s931_s27, %s1200_s24 }
 0x3eb   : > { %p933_p2 = pnand %p932_p0, %p1289_p10 }
 0x3ec   : > { %p938_p13 = por %p937_p11, %p936_p8 }
 0x3ed   : > { %p934_p4 = pneg %p933_p2 }
 0x3ee   : > { %p940_p3 = por %p939_p1, %p938_p13 }
 0x3f0   : > { %p941_p5 = pnand %p940_p3, %p934_p4 }
 0x3f2   : > { %944 = shalt.err (!%p941_p5)
}
 0x3f3   : > { %778 = dma.vmem_to_hbm [thread:$0]  (%p1289_p10), %s1188_s12, 128, %s1200_s24, %s508_s0  }
 0x3f4 PF: > { %p794_p6 = scmp.ge.s32.totalorder %s1003_s23, 2  ;;  %s546_s8 = sand.u32 1, %s983_s18  }
 0x3f5   : > { %p1290_p7 = scmp.ne.s32.totalorder %s1280_s30, 0  ;;  %s547_s15 = scalar_lea.sflag [#allocation8], %s546_s8 }
 0x3f7   : > { %p786_p9 = pnand %p794_p6, %p1290_p7 }
 0x3f9   : > { %974 = dma.done.wait (!%p786_p9), %s547_s15, 128  }
 0x3fa   : > { %976 = vsyncadd (!%p786_p9), %s547_s15, 4294967168  ;;  %s556_s16 = scalar_lea.sflag [#allocation11], %s546_s8 }
 0x3fb   : > { %978 = dma.done.wait (!%p786_p9), %s556_s16, 128  }
 0x3fc   : > { %980 = vsyncadd (!%p786_p9), %s556_s16, 4294967168  ;;  %s23_s23 = sadd.s32 1, %s1003_s23   ;;  %s1291_s18 = smov %s987_s19 }
 0x3fd   : > { %p20_p12 = scmp.ge.s32.totalorder %s23_s23, 4   ;;  %s1292_s19 = smov %s991_s20 }
 0x3fe   : > { %s1293_s20 = smov %s1098_s6  ;;  %s1294_s21 = smov %s999_s22 }
 0x3ff   : > { %s1295_s22 = smov %s1297_s26  ;;  %22 = sbr.rel (!%p20_p12) target bundleno = 9 (0x9), region = 108 }
 0x406   :  { %561 = vsyncpa [#allocation7], 1 }
 0x407   :  { %563 = vsyncpa [#allocation7 + $0x1], 1 }
 0x408   :  { %564 = vsyncpa [#allocation8], 1 }
 0x409   :  { %566 = vsyncpa [#allocation8 + $0x1], 1 }
 0x40a   :  { %567 = vsyncpa [#allocation11], 1 }
 0x40b   :  { %569 = vsyncpa [#allocation11 + $0x1], 1 }

</bundles_post_ra>
